<compile_context>
chip_gen: v7x
topology: tpu7x:2x2x1
jax: 0.10.0
libtpu: 0.0.40
codegen_flags: <defaults>
</compile_context>

<pallas_src>
import functools
import math

import jax
import jax.numpy as jnp
from jax import lax
from jax.experimental import pallas as pl
from jax.experimental.pallas import tpu as pltpu


_NEG_INF = -1e30                       # finite "minus infinity": never produces NaN
_VMEM_LIMIT = 48 * 1024 * 1024         # safe on v5e/v6e (128 MiB) and v7x (64 MiB)


def _round_up(x, m):
    return -(-x // m) * m


def _choose_tile(dim, target, align):
    """Largest tile <= target that divides `dim` and is a multiple of `align`,
    falling back to the full dimension (always a legal block size)."""
    if dim <= target:
        return dim
    t = (target // align) * align
    while t >= align:
        if dim % t == 0:
            return t
        t -= align
    return dim


def _pad_last_dim(a, mult):
    n = a.shape[-1]
    n_pad = _round_up(n, mult)
    if n_pad == n:
        return a
    return jnp.pad(a, ((0, 0), (0, n_pad - n)))


def _choose_head_group(num_heads, head_dim, target_lanes=512):
    """Head-group size hg with hg | num_heads and hg*head_dim % 128 == 0 (lane-legal
    Q block), preferring ~target_lanes wide groups.  Returns None if impossible."""
    legal = [hg for hg in range(1, num_heads + 1)
             if num_heads % hg == 0 and (hg * head_dim) % 128 == 0]
    if not legal:
        return None
    fitting = [hg for hg in legal if hg * head_dim <= target_lanes]
    return max(fitting) if fitting else min(legal)


# ------------------------------ tiled matmul ------------------------------- #
def _matmul_kernel(x_ref, w_ref, o_ref, acc_ref):
    @pl.when(pl.program_id(2) == 0)
    def _init():
        acc_ref[...] = jnp.zeros_like(acc_ref)

    acc_ref[...] += jnp.dot(x_ref[...], w_ref[...],
                            preferred_element_type=jnp.float32)

    @pl.when(pl.program_id(2) == pl.num_programs(2) - 1)
    def _store():
        o_ref[...] = acc_ref[...].astype(o_ref.dtype)


def pallas_matmul(x, w, out_dtype=None, tm=256, tn=256, tk=512):
    """MXU matmul with f32 accumulation.  Weight N dims are padded to 128 multiples
    in prepare_falcon_attention_params, so tn never falls back to a huge full-dim
    weight block on production shapes (tk may fall back to full K, which stays small)."""
    M, K = x.shape
    K2, N = w.shape
    assert K == K2
    out_dtype = out_dtype or x.dtype
    tm = _choose_tile(M, tm, 8)
    tn = _choose_tile(N, tn, 128)
    tk = _choose_tile(K, tk, 128)
    return pl.pallas_call(
        _matmul_kernel,
        out_shape=jax.ShapeDtypeStruct((M, N), out_dtype),
        grid=(M // tm, N // tn, K // tk),
        in_specs=[
            pl.BlockSpec((tm, tk), lambda i, j, k: (i, k)),
            pl.BlockSpec((tk, tn), lambda i, j, k: (k, j)),
        ],
        out_specs=pl.BlockSpec((tm, tn), lambda i, j, k: (i, j)),
        scratch_shapes=[pltpu.VMEM((tm, tn), jnp.float32)],
        compiler_params=pltpu.CompilerParams(
            dimension_semantics=("parallel", "parallel", "arbitrary"),
            vmem_limit_bytes=_VMEM_LIMIT,
        ),
    )(x, w)


# --------------------- fused RoPE + flash attention kernel ------------------ #
def _flash_rope_kernel(qi_map_ref, ki_map_ref,
                       q_ref, ropeq_ref, k_ref, ropek_ref, v_ref,
                       o_ref, qrot_ref, acc_ref, m_ref, l_ref,
                       *, heads_per_group, head_dim, scale, compute_dtype):
    t = pl.program_id(2)
    qi = qi_map_ref[t]
    ki = ki_map_ref[t]
    D = head_dim
    half = D // 2

    # First kv step of this q block: rotate + scale Q once into VMEM, reset stats.
    @pl.when(ki == 0)
    def _init():
        ropeq = ropeq_ref[...]                       # (T, D) f32, [cos | sin]
        cos_q, sin_q = ropeq[:, :half], ropeq[:, half:]
        q = q_ref[0]                                 # (T, hg*D) compute dtype
        pieces = []
        for hh in range(heads_per_group):            # bounded static unroll
            lo = hh * D
            x1 = q[:, lo:lo + half].astype(jnp.float32)
            x2 = q[:, lo + half:lo + D].astype(jnp.float32)
            pieces.append((x1 * cos_q - x2 * sin_q) * scale)
            pieces.append((x1 * sin_q + x2 * cos_q) * scale)
        qrot_ref[...] = jnp.concatenate(pieces, axis=-1).astype(compute_dtype)
        m_ref[...] = jnp.full_like(m_ref, _NEG_INF)
        l_ref[...] = jnp.zeros_like(l_ref)
        acc_ref[...] = jnp.zeros_like(acc_ref)

    # Rotate the shared multi-query K block for this step (VPU work, << matmul cost).
    ropek = ropek_ref[...]
    cos_k, sin_k = ropek[:, :half], ropek[:, half:]
    kx = k_ref[0]                                    # (T, D)
    k1 = kx[:, :half].astype(jnp.float32)
    k2 = kx[:, half:].astype(jnp.float32)
    k_rot = jnp.concatenate([k1 * cos_k - k2 * sin_k,
                             k1 * sin_k + k2 * cos_k],
                            axis=-1).astype(compute_dtype)
    v = v_ref[0]                                     # (T, D)

    def _accumulate(masked):
        q_all = qrot_ref[...]
        m_all = m_ref[...]
        l_all = l_ref[...]
        acc_all = acc_ref[...]
        if masked:                                   # diagonal block only
            Tq, Tk = q_all.shape[0], k_rot.shape[0]
            rows = lax.broadcasted_iota(jnp.int32, (Tq, Tk), 0)
            cols = lax.broadcasted_iota(jnp.int32, (Tq, Tk), 1)
            keep = rows >= cols
        new_m, new_l, new_acc = [], [], []
        for hh in range(heads_per_group):            # bounded static unroll
            lo = hh * D
            s = lax.dot_general(q_all[:, lo:lo + D], k_rot,
                                (((1,), (1,)), ((), ())),
                                preferred_element_type=jnp.float32)   # (T, T)
            if masked:
                s = jnp.where(keep, s, _NEG_INF)
            m_prev = m_all[:, lo:lo + D]             # cols all equal per head
            m_new = jnp.maximum(m_prev, jnp.max(s, axis=-1, keepdims=True))
            alpha = jnp.exp(m_prev - m_new)
            p = jnp.exp(s - m_new[:, :1])
            new_m.append(m_new)
            new_l.append(alpha * l_all[:, lo:lo + D]
                         + jnp.sum(p, axis=-1, keepdims=True))
            new_acc.append(alpha * acc_all[:, lo:lo + D]
                           + jnp.dot(p.astype(v.dtype), v,
                                     preferred_element_type=jnp.float32))
        # single full-width (lane-dense) scratch writes
        m_ref[...] = jnp.concatenate(new_m, axis=-1)
        l_ref[...] = jnp.concatenate(new_l, axis=-1)
        acc_ref[...] = jnp.concatenate(new_acc, axis=-1)

    @pl.when(ki < qi)            # strictly below diagonal: no masking, no iota/select
    def _off_diag():
        _accumulate(masked=False)

    @pl.when(ki == qi)           # diagonal block: mask, then finalize this q block
    def _diag():
        _accumulate(masked=True)
        o_ref[0] = (acc_ref[...] *
                    pl.reciprocal(l_ref[...], approx=True)).astype(o_ref.dtype)


def _flash_attention_fused_rope(q_src, xk, xv, rope, *, num_heads, head_dim,
                                heads_per_group, out_hidden, compute_dtype,
                                block_q=256):
    """Flash attention with fused rotary embedding.

    q_src : (B, S, >= num_heads*head_dim) — Q columns read straight out of the fused
            qkv buffer (head group g reads columns [g*hg*D, (g+1)*hg*D)).
    xk/xv : (B, S, head_dim) shared multi-query K / V.
    rope  : (S, head_dim) f32 table with [cos | sin] halves.
    """
    B, S, _ = q_src.shape
    D = head_dim
    hg = heads_per_group
    G = num_heads // hg
    T = _choose_tile(S, block_q, 8)           # raise block_q per-generation if desired
    nq = S // T

    # Lower-triangular (qi, ki) schedule: only causally-relevant steps are run.
    qi_list, ki_list = [], []
    for q in range(nq):
        for k in range(q + 1):
            qi_list.append(q)
            ki_list.append(k)
    qi_map = jnp.asarray(qi_list, dtype=jnp.int32)
    ki_map = jnp.asarray(ki_list, dtype=jnp.int32)
    steps = len(qi_list)

    kern = functools.partial(_flash_rope_kernel, heads_per_group=hg, head_dim=D,
                             scale=1.0 / math.sqrt(D), compute_dtype=compute_dtype)

    return pl.pallas_call(
        kern,
        out_shape=jax.ShapeDtypeStruct((B, S, out_hidden), compute_dtype),
        grid_spec=pltpu.PrefetchScalarGridSpec(
            num_scalar_prefetch=2,
            grid=(B, G, steps),
            in_specs=[
                pl.BlockSpec((1, T, hg * D), lambda b, g, t, qm, km: (b, qm[t], g)),
                pl.BlockSpec((T, D),         lambda b, g, t, qm, km: (qm[t], 0)),
                pl.BlockSpec((1, T, D),      lambda b, g, t, qm, km: (b, km[t], 0)),
                pl.BlockSpec((T, D),         lambda b, g, t, qm, km: (km[t], 0)),
                pl.BlockSpec((1, T, D),      lambda b, g, t, qm, km: (b, km[t], 0)),
            ],
            out_specs=pl.BlockSpec((1, T, hg * D),
                                   lambda b, g, t, qm, km: (b, qm[t], g)),
            scratch_shapes=[
                pltpu.VMEM((T, hg * D), compute_dtype),   # rotated + scaled Q block
                pltpu.VMEM((T, hg * D), jnp.float32),     # acc
                pltpu.VMEM((T, hg * D), jnp.float32),     # running max (per-head bcast)
                pltpu.VMEM((T, hg * D), jnp.float32),     # running sum (per-head bcast)
            ],
        ),
        compiler_params=pltpu.CompilerParams(
            dimension_semantics=("parallel", "parallel", "arbitrary"),
            vmem_limit_bytes=_VMEM_LIMIT,
        ),
    )(qi_map, ki_map, q_src, rope, xk, rope, xv)


# ------------------------------ rope table --------------------------------- #
def precompute_rope_table(seqlen, head_dim, theta=10000.0, start_pos=0):
    """(S, head_dim) f32 table with [cos | sin] halves merged into one lane load."""
    freqs = 1.0 / (theta ** (jnp.arange(0, head_dim, 2, dtype=jnp.float32) / head_dim))
    t = jnp.arange(start_pos, start_pos + seqlen, dtype=jnp.float32)
    angles = jnp.outer(t, freqs)                              # (S, head_dim // 2)
    return jnp.concatenate([jnp.cos(angles), jnp.sin(angles)], axis=-1)


# ------------------------- weight prep (one-time) --------------------------- #
def prepare_falcon_attention_params(wq, wk, wv, wd, compute_dtype=jnp.bfloat16):
    """Hoisted out of the per-call forward: fuse QKV, cast to the MXU compute dtype
    and pad weight output (lane) dims to multiples of 128 so matmul tile selection
    never falls back to a huge full-dim weight block on real Falcon shapes."""
    hidden, head_dim = wk.shape
    num_heads = wq.shape[1] // head_dim
    w_qkv = _pad_last_dim(jnp.concatenate([wq, wk, wv], axis=1).astype(compute_dtype), 128)
    wd_p = _pad_last_dim(wd.astype(compute_dtype), 128)
    return dict(w_qkv=w_qkv, wd=wd_p, hidden=hidden, head_dim=head_dim,
                num_heads=num_heads)


# --------------------------- module forward pass ---------------------------- #
def falcon_attention_forward(x, params, start_pos=0, theta=10000.0):
    """FalconAttention.forward: multi_query=True, mask='causal', no kv-cache, dropout=0.
    MXU operands in bf16 with f32 accumulation; softmax / rotary math in f32."""
    B, S, H = x.shape
    D = params["head_dim"]
    NH = params["num_heads"]
    assert H == params["hidden"] and H == NH * D
    cdt = params["w_qkv"].dtype

    # Fused QKV projection: one pass over x, lane-dense output.
    x2d = x.reshape(B * S, H).astype(cdt)
    qkv = pallas_matmul(x2d, params["w_qkv"], out_dtype=cdt)   # (B*S, >= H + 2D)
    qkv = qkv.reshape(B, S, -1)

    # Only the tiny multi-query K / V columns are sliced; Q stays inside qkv.
    xk = qkv[:, :, H:H + D]
    xv = qkv[:, :, H + D:H + 2 * D]

    rope = precompute_rope_table(S, D, theta=theta, start_pos=start_pos)

    hg = _choose_head_group(NH, D)
    if hg is None:
        # TODO(synk): head counts where no divisor gives a 128-lane-aligned group
        # (e.g. 71 local heads at D=64) fall back to one group over a sliced Q.
        q_src = qkv[:, :, :H]
        hg = NH
    else:
        q_src = qkv

    attn = _flash_attention_fused_rope(q_src, xk, xv, rope, num_heads=NH,
                                       head_dim=D, heads_per_group=hg,
                                       out_hidden=H, compute_dtype=cdt)

    # TODO(synk): kv-cache / start_pos>0 decode path (cache writeback + prefix
    # attention) is not implemented; this covers the module's no-cache causal case.
    out = pallas_matmul(attn.reshape(B * S, H), params["wd"], out_dtype=jnp.float32)
    if out.shape[1] != H:
        out = out[:, :H]               # drop the dense weight's lane padding
    return out.reshape(B, S, H).astype(x.dtype)


if __name__ == "__main__":
    # Small-but-consistent shapes: hidden=128, heads=4 -> head_dim=32 (multi-query).
    B, S, H, NH = 2, 8, 128, 4
    D = H // NH

    key = jax.random.PRNGKey(0)
    k1, k2, k3, k4, k5 = jax.random.split(key, 5)
    init = 0.02                                               # ModelArgs.initializer_range
    x = jax.random.normal(k1, (B, S, H), jnp.float32)
    wq = init * jax.random.normal(k2, (H, H), jnp.float32)
    wk = init * jax.random.normal(k3, (H, D), jnp.float32)    # multi_query: hidden -> head_dim
    wv = init * jax.random.normal(k4, (H, D), jnp.float32)
    wd = init * jax.random.normal(k5, (H, H), jnp.float32)    # dense (row-parallel) proj

    params = prepare_falcon_attention_params(wq, wk, wv, wd)  # one-time weight prep
    out = falcon_attention_forward(x, params, start_pos=0,
                                   theta=10000.0)             # ModelArgs.rope_theta
    jax.block_until_ready(out)
    assert out.shape == (B, S, H)
    print("KERNEL_OK")
</pallas_src>

<mosaic_0001>
module attributes {stable_mosaic.version = 11 : i64} {
  func.func @_matmul_kernel(%arg0: i32, %arg1: i32, %arg2: i32, %arg3: memref<16x128xbf16, #tpu.memory_space<vmem>>, %arg4: memref<128x256xbf16, #tpu.memory_space<vmem>>, %arg5: memref<16x256xbf16, #tpu.memory_space<vmem>>, %arg6: memref<16x256xf32, #tpu.memory_space<vmem>>) attributes {dimension_semantics = [#tpu.dimension_semantics<parallel>, #tpu.dimension_semantics<parallel>, #tpu.dimension_semantics<arbitrary>], iteration_bounds = array<i64: 1, 1, 1>, scalar_prefetch = 0 : i64, scratch_operands = 1 : i64, tpu.core_type = #tpu.core_type<tc>, window_params = [{transform_indices = @transform_0, window_bounds = array<i64: 16, 128>}, {transform_indices = @transform_1, window_bounds = array<i64: 128, 256>}, {transform_indices = @transform_2, window_bounds = array<i64: 16, 256>}]} {
    %c0_i32 = arith.constant 0 : i32
    %0 = arith.cmpi eq, %arg2, %c0_i32 : i32
    %1 = arith.extui %0 : i1 to i32
    %c0_i32_0 = arith.constant 0 : i32
    %2 = arith.cmpi ne, %1, %c0_i32_0 : i32
    scf.if %2 {
      %cst_10 = arith.constant 0.000000e+00 : f32
      %12 = vector.broadcast %cst_10 : f32 to vector<16x256xf32>
      %c0_11 = arith.constant 0 : index
      %c0_12 = arith.constant 0 : index
      %13 = vector.load %arg6[%c0_11, %c0_12] : memref<16x256xf32, #tpu.memory_space<vmem>>, vector<16x256xf32>
      tpu.vector_store %arg6[%c0_11, %c0_12], %12 {strides = array<i32>} : memref<16x256xf32, #tpu.memory_space<vmem>>, vector<16x256xf32>,
    } else {
    }
    %c0 = arith.constant 0 : index
    %c0_1 = arith.constant 0 : index
    %3 = vector.load %arg6[%c0, %c0_1] : memref<16x256xf32, #tpu.memory_space<vmem>>, vector<16x256xf32>
    %c0_2 = arith.constant 0 : index
    %c0_3 = arith.constant 0 : index
    %4 = vector.load %arg3[%c0_2, %c0_3] : memref<16x128xbf16, #tpu.memory_space<vmem>>, vector<16x128xbf16>
    %c0_4 = arith.constant 0 : index
    %c0_5 = arith.constant 0 : index
    %5 = vector.load %arg4[%c0_4, %c0_5] : memref<128x256xbf16, #tpu.memory_space<vmem>>, vector<128x256xbf16>
    %cst = arith.constant dense<0.000000e+00> : vector<16x256xf32>
    %6 = tpu.matmul %4, %5, %cst {dimension_numbers = #tpu.dot_dimension_numbers<[1], [0], [0], [1], [0, 0, 1, 1], [], []>} : vector<16x128xbf16>, vector<128x256xbf16>, vector<16x256xf32> -> vector<16x256xf32>
    %7 = arith.addf %3, %6 : vector<16x256xf32>
    %c0_6 = arith.constant 0 : index
    %c0_7 = arith.constant 0 : index
    %8 = vector.load %arg6[%c0_6, %c0_7] : memref<16x256xf32, #tpu.memory_space<vmem>>, vector<16x256xf32>
    tpu.vector_store %arg6[%c0_6, %c0_7], %7 {strides = array<i32>} : memref<16x256xf32, #tpu.memory_space<vmem>>, vector<16x256xf32>,
    %c0_i32_8 = arith.constant 0 : i32
    %9 = arith.cmpi eq, %arg2, %c0_i32_8 : i32
    %10 = arith.extui %9 : i1 to i32
    %c0_i32_9 = arith.constant 0 : i32
    %11 = arith.cmpi ne, %10, %c0_i32_9 : i32
    scf.if %11 {
      %c0_10 = arith.constant 0 : index
      %c0_11 = arith.constant 0 : index
      %12 = vector.load %arg6[%c0_10, %c0_11] : memref<16x256xf32, #tpu.memory_space<vmem>>, vector<16x256xf32>
      %13 = arith.truncf %12 : vector<16x256xf32> to vector<16x256xbf16>
      %c0_12 = arith.constant 0 : index
      %c0_13 = arith.constant 0 : index
      %14 = vector.load %arg5[%c0_12, %c0_13] : memref<16x256xbf16, #tpu.memory_space<vmem>>, vector<16x256xbf16>
      tpu.vector_store %arg5[%c0_12, %c0_13], %13 {strides = array<i32>} : memref<16x256xbf16, #tpu.memory_space<vmem>>, vector<16x256xbf16>,
    } else {
    }
    return
  }
  func.func @transform_0(%arg0: i32, %arg1: i32, %arg2: i32) -> (i32, i32) {
    %c0_i32 = arith.constant 0 : i32
    return %arg0, %arg2 : i32, i32
  }
  func.func @transform_1(%arg0: i32, %arg1: i32, %arg2: i32) -> (i32, i32) {
    %c0_i32 = arith.constant 0 : i32
    return %arg2, %arg1 : i32, i32
  }
  func.func @transform_2(%arg0: i32, %arg1: i32, %arg2: i32) -> (i32, i32) {
    %c0_i32 = arith.constant 0 : i32
    return %arg0, %arg1 : i32, i32
  }
}

</mosaic_0001>

<bundles_post_ra>
// kernel: tpu_custom_call.1
= control target key start
LH: loop header
LB: loop body
LE: loop exit
PB: predicated region body
PF: predicated region fallthrough
CT: control target
= control target key end

     0   :  { %7 = vsyncpa [#allocation4], 0  ;;  %s438_s0 = inlined_call_operand.hbm [shape: bf16[16,128], index: 0, kind: input, shape index: {}]   ;;  %s439_s1 = inlined_call_operand.hbm [shape: bf16[128,256], index: 1, kind: input, shape index: {}]   ;;  %s440_s2 = inlined_call_operand.hbm [shape: bf16[16,256], index: 2, kind: output, shape index: {}]  }
   0x1   :  { %8 = vsyncpa [#allocation7], 0 }
   0x2   :  { %9 = vsyncpa [#allocation5], 0  ;;  %s373_s9 = smov [#allocation3]   ;;  %s301_s13 = scalar_lea.hbm %s438_s0, 128 }
   0x3   :  { %s15_s10 = sshll.u32 %s373_s9, 4  ;;  %p302_p0 = scmp.ne.s32.totalorder %s438_s0, %s301_s13  ;;  %s16_s10 = int_to_ptr.vmem [resolvable:$true] %s15_s10 }
   0x4   :  { %p305_p1 = scmp.lt.u32.totalorder %s301_s13, %s438_s0 }
   0x6   :  { %p307_p2 = pnand %p305_p1, %p302_p0 }
   0x8   :  { %310 = shalt.err (!%p307_p2)
}
   0x9   :  { %s311_s18 = scalar_lea.vmem %s16_s10, 128  ;;  %p316_p4 = scmp.lt.s32.totalorder %s16_s10, %s16_s10 }
   0xa   :  { %p312_p3 = scmp.ne.s32.totalorder %s16_s10, %s311_s18  ;;  %p317_p5 = scmp.lt.s32.totalorder %s311_s18, %s311_s18 }
   0xc   :  { %p318_p6 = por %p317_p5, %p316_p4 }
   0xe   :  { %p319_p7 = pnand %p318_p6, %p312_p3 }
  0x10   :  { %322 = shalt.err (!%p319_p7)
}
  0x11   :  { %s374_s19 = smov 64   ;;  %s375_s20 = smov 4  }
  0x12   :  { %21 = dma.hbm_to_vmem [thread:$0]  %s438_s0, 128, %s16_s10, [#allocation4], %s374_s19, %s374_s19, %s375_s20  }
  0x13   :  { %s376_s23 = smov [#allocation6]   ;;  %s323_s27 = scalar_lea.hbm %s439_s1, 2048 }
  0x14   :  { %s27_s24 = sshll.u32 %s376_s23, 4  ;;  %p324_p8 = scmp.ne.s32.totalorder %s439_s1, %s323_s27  ;;  %s28_s24 = int_to_ptr.vmem [resolvable:$true] %s27_s24 }
  0x15   :  { %p327_p9 = scmp.lt.u32.totalorder %s323_s27, %s439_s1 }
  0x17   :  { %p329_p10 = pnand %p327_p9, %p324_p8 }
  0x19   :  { %332 = shalt.err (!%p329_p10)
}
  0x1a   :  { %s333_s4 = scalar_lea.vmem %s28_s24, 2048  ;;  %p338_p12 = scmp.lt.s32.totalorder %s28_s24, %s28_s24 }
  0x1b   :  { %p334_p11 = scmp.ne.s32.totalorder %s28_s24, %s333_s4  ;;  %p339_p13 = scmp.lt.s32.totalorder %s333_s4, %s333_s4 }
  0x1d   :  { %p340_p0 = por %p339_p13, %p338_p12 }
  0x1f   :  { %p341_p1 = pnand %p340_p0, %p334_p11 }
  0x21   :  { %344 = shalt.err (!%p341_p1)
}
  0x22   :  { %s377_s0 = smov 128   ;;  %s378_s5 = smov 8  }
  0x23   :  { %33 = dma.hbm_to_vmem [thread:$0]  %s439_s1, 2048, %s28_s24, [#allocation7], %s377_s0, %s377_s0, %s378_s5  }
  0x24   :  { %367 = dma.done.wait [#allocation4], 128  }
  0x25   :  { %368 = vsyncadd [#allocation4], 4294967168 }
  0x26   :  { %369 = dma.done.wait [#allocation7], 2048  }
  0x27   :  { %370 = vsyncadd [#allocation7], 4294965248  ;;  %v379_v0 = vmov 0   ;;  %v276_v1 = vld [vmem:[#allocation6 + $0x4] ss:$8 sps:$4 sm:$0xff]   ;;  %v300_v17 = vld [vmem:[#allocation3] sm:$0xff]  }
  0x28   :  { %189 = vmatprep.mubr.bf16.mxu0 %v379_v0  ;;  %v278_v2 = vld [vmem:[#allocation6] ss:$8 sps:$4 sm:$0xff]   ;;  %157 = vmatprep.subr.bf16.mxu0 %v276_v1  ;;  %v279_v3 = vld [vmem:[#allocation6 + $0x14] ss:$8 sps:$4 sm:$0xff]   ;;  %v281_v4 = vld [vmem:[#allocation6 + $0x10] ss:$8 sps:$4 sm:$0xff]  }
  0x29   :  { %158 = vmatpush1.bf16.msra.mxu0 %v278_v2  ;;  %v282_v5 = vld [vmem:[#allocation6 + $0x24] ss:$8 sps:$4 sm:$0xff]   ;;  %v284_v6 = vld [vmem:[#allocation6 + $0x20] ss:$8 sps:$4 sm:$0xff]   ;;  %v285_v7 = vld [vmem:[#allocation6 + $0x34] ss:$8 sps:$4 sm:$0xff]  }
  0x2a   :  { %159 = vmatprep.subr.bf16.mxu0 %v279_v3  ;;  %v287_v8 = vld [vmem:[#allocation6 + $0x30] ss:$8 sps:$4 sm:$0xff]   ;;  %v288_v9 = vld [vmem:[#allocation6 + $0x44] ss:$8 sps:$4 sm:$0xff]   ;;  %v290_v10 = vld [vmem:[#allocation6 + $0x40] ss:$8 sps:$4 sm:$0xff]  }
  0x2b   :  { %v291_v11 = vld [vmem:[#allocation6 + $0x54] ss:$8 sps:$4 sm:$0xff]   ;;  %v293_v12 = vld [vmem:[#allocation6 + $0x50] ss:$8 sps:$4 sm:$0xff]   ;;  %v294_v13 = vld [vmem:[#allocation6 + $0x64] ss:$8 sps:$4 sm:$0xff]  }
  0x2c   :  { %v296_v14 = vld [vmem:[#allocation6 + $0x60] ss:$8 sps:$4 sm:$0xff]   ;;  %v297_v15 = vld [vmem:[#allocation6 + $0x74] ss:$8 sps:$4 sm:$0xff]   ;;  %v299_v16 = vld [vmem:[#allocation6 + $0x70] ss:$8 sps:$4 sm:$0xff]  }
  0x2d   :  { %160 = vmatpush1.bf16.msra.mxu0 %v281_v4  ;;  %s380_s1 = smov [#allocation8]  }
  0x2e   :  { %161 = vmatprep.subr.bf16.mxu0 %v282_v5  ;;  %s234_s8 = sshll.u32 %s380_s1, 4  ;;  %s235_s8 = int_to_ptr.vmem [resolvable:$true] %s234_s8 }
  0x2f   :  { %s345_s9 = scalar_lea.vmem %s235_s8, 256  ;;  %p350_p3 = scmp.lt.s32.totalorder %s235_s8, %s235_s8 }
  0x30   :  { %p346_p2 = scmp.ne.s32.totalorder %s235_s8, %s345_s9  ;;  %p351_p4 = scmp.lt.s32.totalorder %s345_s9, %s345_s9 }
  0x31   :  { %162 = vmatpush1.bf16.msra.mxu0 %v284_v6 }
  0x32   :  { %163 = vmatprep.subr.bf16.mxu0 %v285_v7  ;;  %p352_p5 = por %p351_p4, %p350_p3 }
  0x34   :  { %p353_p6 = pnand %p352_p5, %p346_p2 }
  0x35   :  { %164 = vmatpush1.bf16.msra.mxu0 %v287_v8 }
  0x36   :  { %165 = vmatprep.subr.bf16.mxu0 %v288_v9 }
  0x39   :  { %166 = vmatpush1.bf16.msra.mxu0 %v290_v10 }
  0x3a   :  { %167 = vmatprep.subr.bf16.mxu0 %v291_v11 }
  0x3d   :  { %168 = vmatpush1.bf16.msra.mxu0 %v293_v12 }
  0x3e   :  { %169 = vmatprep.subr.bf16.mxu0 %v294_v13 }
  0x41   :  { %170 = vmatpush1.bf16.msra.mxu0 %v296_v14 }
  0x42   :  { %171 = vmatprep.subr.bf16.mxu0 %v297_v15 }
  0x45   :  { %172 = vmatpush1.bf16.msra.mxu0 %v299_v16 }
  0x48   :  { %190 = vmatmul.mubr.bf16.vlgmr.msra.gmra.mrb[0].mxu0 %v300_v17 }
 0x11b   :  { %v191_v18 = vpop.f32.mrb[0].mxu0 }
 0x11c   :  { %v193_v19 = vpop.f32.mrb[1].mxu0 }
 0x11d   :  { %v266_v20 = vpack.c.bf16 %v193_v19, %v191_v18  ;;  %v195_v21 = vpop.f32.mrb[2].mxu0 }
 0x11e   :  { %v197_v22 = vpop.f32.mrb[3].mxu0 }
 0x11f   :  { %227 = vst [vmem:[#allocation8] sm:$0xff] %v266_v20  ;;  %v267_v23 = vpack.c.bf16 %v197_v22, %v195_v21 }
 0x121   :  { %228 = vst [vmem:[#allocation8 + $0x8] sm:$0xff] %v267_v23 }
 0x122   :  { %356 = shalt.err (!%p353_p6)
}
 0x123   :  { %s357_s12 = scalar_lea.hbm %s440_s2, 256 }
 0x124   :  { %p358_p7 = scmp.ne.s32.totalorder %s440_s2, %s357_s12  ;;  %p361_p8 = scmp.lt.u32.totalorder %s357_s12, %s440_s2 }
 0x126   :  { %p363_p9 = pnand %p361_p8, %p358_p7 }
 0x128   :  { %366 = shalt.err (!%p363_p9)
}
 0x129   :  { %240 = dma.vmem_to_hbm [thread:$0]  %s235_s8, 256, %s440_s2, [#allocation5], %s377_s0, %s377_s0, %s378_s5  }
 0x12a   :  { %371 = dma.done.wait [#allocation5], 256  }
 0x12b   :  { %372 = vsyncadd [#allocation5], 4294967040 }
 0x12c   :  { %244 = vsyncpa [#allocation4], 1 }
 0x12d   :  { %245 = vsyncpa [#allocation7], 1 }
 0x12e   :  { %246 = vsyncpa [#allocation5], 1 }

</bundles_post_ra>
